<compile_context>
chip_gen: v7x
topology: tpu7x:2x2x1
jax: 0.10.0
libtpu: 0.0.40
codegen_flags: <defaults>
</compile_context>

<pallas_src>
import math
import functools

import jax
import jax.numpy as jnp
from jax.experimental import pallas as pl
from jax.experimental.pallas import tpu as pltpu


# ----------------------------------------------------------------------------
# Kernel: one (TS, B*D) tile -> y = x + pe, optional inverted dropout.
# ----------------------------------------------------------------------------
def _pe_add_dropout_kernel(seed_ref, x_ref, pe_ref, o_ref, *,
                           keep_threshold, scale, training):
    y = x_ref[...] + pe_ref[...]                       # lane-dense 2-D add

    if training:
        ts, bd = x_ref.shape
        # Global element index (unique per element, per tile) -> hash -> bits.
        row0 = pl.program_id(0) * ts
        rows = jax.lax.broadcasted_iota(jnp.int32, (ts, bd), 0) + row0
        cols = jax.lax.broadcasted_iota(jnp.int32, (ts, bd), 1)
        idx = (rows * bd + cols).astype(jnp.uint32)

        seed_u = seed_ref[0].astype(jnp.uint32)
        h = idx ^ (seed_u * jnp.uint32(0x9E3779B9))
        # murmur3 fmix32 finalizer
        h = h ^ (h >> 16)
        h = h * jnp.uint32(0x85EBCA6B)
        h = h ^ (h >> 13)
        h = h * jnp.uint32(0xC2B2AE35)
        h = h ^ (h >> 16)

        keep = h >= jnp.uint32(keep_threshold)          # P(keep) = 1 - p
        y = jnp.where(keep, y, jnp.zeros_like(y)) * jnp.asarray(scale, y.dtype)

    o_ref[...] = y.astype(o_ref.dtype)


# ----------------------------------------------------------------------------
# Buffer construction — mirrors the PyTorch __init__ exactly.
# ----------------------------------------------------------------------------
def make_pe_buffer(d_model: int, max_len: int) -> jnp.ndarray:
    position = jnp.arange(0, max_len, dtype=jnp.float32)[:, None]           # (L, 1)
    div_term = jnp.exp(jnp.arange(0, d_model, 2, dtype=jnp.float32)
                       * (-math.log(10000.0) / d_model))                    # (ceil(D/2),)
    ang = position * div_term                                               # (L, ceil(D/2))
    pe = jnp.zeros((max_len, d_model), dtype=jnp.float32)
    pe = pe.at[:, 0::2].set(jnp.sin(ang))
    if d_model % 2 != 0:
        pe = pe.at[:, 1::2].set(jnp.cos(ang)[:, :-1])
    else:
        pe = pe.at[:, 1::2].set(jnp.cos(ang))
    # unsqueeze(0).transpose(0,1) -> (max_len, 1, d_model)
    return pe[:, None, :]


# ----------------------------------------------------------------------------
# Tile sizing: ~2 MiB per x tile (multiple of 8 rows), so double-buffered
# x + pe + out stays within default scoped VMEM on v5e/v6e/v7x.
# ----------------------------------------------------------------------------
def _pick_tile_rows(n_rows: int, row_bytes: int, target_bytes: int = 2 * 1024 * 1024) -> int:
    ts = (target_bytes // max(row_bytes, 1)) // 8 * 8
    ts = max(ts, 8)
    if ts >= n_rows:
        return int(n_rows)      # full extent (always a legal block dim)
    return int(ts)


# ----------------------------------------------------------------------------
# Wrapper
# ----------------------------------------------------------------------------
def positional_encoding_forward(x, pe_buffer, *, p=0.1, training=False, seed=0):
    """x: (S, B, D).  pe_buffer: (max_len, 1, D).  Returns (S, B, D)."""
    S, B, D = x.shape
    BD = B * D
    p = float(p)
    apply_dropout = bool(training) and p > 0.0
    if apply_dropout and p >= 1.0:
        return jnp.zeros_like(x)

    # Lane-dense 2-D slabs: x (S, B*D); pe tiled over batch to the same shape.
    x2 = x.reshape(S, BD)
    pe2 = jnp.tile(pe_buffer[:S, 0, :], (1, B)).astype(x.dtype)   # (S, B*D)

    itemsize = jnp.dtype(x.dtype).itemsize
    ts = _pick_tile_rows(S, BD * itemsize)
    grid = (pl.cdiv(S, ts),)

    seed_arr = jnp.asarray([seed], dtype=jnp.int32)
    keep_threshold = int(min(max(round(p * 4294967296.0), 0), 4294967295)) if apply_dropout else 0
    scale = (1.0 / (1.0 - p)) if apply_dropout else 1.0

    kernel = functools.partial(_pe_add_dropout_kernel,
                               keep_threshold=keep_threshold,
                               scale=scale,
                               training=apply_dropout)

    y2 = pl.pallas_call(
        kernel,
        out_shape=jax.ShapeDtypeStruct((S, BD), x.dtype),
        grid=grid,
        in_specs=[
            pl.BlockSpec(memory_space=pltpu.MemorySpace.SMEM),    # seed scalar
            pl.BlockSpec((ts, BD), lambda i: (i, 0)),             # x slab tile
            pl.BlockSpec((ts, BD), lambda i: (i, 0)),             # pe slab tile
        ],
        out_specs=pl.BlockSpec((ts, BD), lambda i: (i, 0)),
        compiler_params=pltpu.CompilerParams(
            dimension_semantics=("parallel",)),
    )(seed_arr, x2, pe2)

    return y2.reshape(S, B, D)


if __name__ == "__main__":
    # Small shapes consistent with the module: seq=8, batch=2, d_model=32.
    S, B, D = 8, 2, 32
    MAX_LEN = 64  # small stand-in for 14678; semantics identical for S <= MAX_LEN

    key = jax.random.PRNGKey(0)
    x = jax.random.normal(key, (S, B, D), dtype=jnp.float32)

    pe_buf = make_pe_buffer(D, MAX_LEN)
    ref = x + pe_buf[:S]                                  # (S,1,D) broadcast over B

    # Eval mode (dropout = identity) — deterministic, verifiable.
    y_eval = positional_encoding_forward(x, pe_buf, p=0.1, training=False)
    y_eval = jax.block_until_ready(y_eval)
    assert y_eval.shape == (S, B, D)
    assert jnp.allclose(y_eval, ref, atol=1e-6), "eval-path mismatch vs reference"

    # Training mode (in-kernel hash dropout) — exercise the stochastic path.
    p_drop = 0.1
    y_train = positional_encoding_forward(x, pe_buf, p=p_drop, training=True, seed=123)
    y_train = jax.block_until_ready(y_train)
    assert y_train.shape == (S, B, D)

    # Kept elements must equal (x + pe) / (1 - p); some elements dropped, some kept.
    expect = ref * jnp.float32(1.0 / (1.0 - p_drop))
    kept = y_train != 0
    assert jnp.allclose(jnp.where(kept, y_train, 0.0),
                        jnp.where(kept, expect, 0.0), atol=1e-5), "kept values wrong"
    n_dropped = int(jnp.sum((y_train == 0) & (jnp.abs(ref) > 1e-8)))
    n_kept = int(jnp.sum(kept))
    assert n_dropped > 0 and n_kept > 0, "dropout mask degenerate"

    print("KERNEL_OK")
</pallas_src>

<mosaic_0001>
module attributes {stable_mosaic.version = 11 : i64} {
  func.func @_pe_add_dropout_kernel(%arg0: i32, %arg1: memref<1xi32, #tpu.memory_space<smem>>, %arg2: memref<8x64xf32, #tpu.memory_space<vmem>>, %arg3: memref<8x64xf32, #tpu.memory_space<vmem>>, %arg4: memref<8x64xf32, #tpu.memory_space<vmem>>) attributes {dimension_semantics = [#tpu.dimension_semantics<parallel>], iteration_bounds = array<i64: 1>, scalar_prefetch = 0 : i64, scratch_operands = 0 : i64, tpu.core_type = #tpu.core_type<tc>, window_params = [{transform_indices = @transform_0, window_bounds = array<i64: 1>}, {transform_indices = @transform_1, window_bounds = array<i64: 8, 64>}, {transform_indices = @transform_2, window_bounds = array<i64: 8, 64>}, {transform_indices = @transform_3, window_bounds = array<i64: 8, 64>}]} {
    %c0 = arith.constant 0 : index
    %c0_0 = arith.constant 0 : index
    %0 = vector.load %arg2[%c0, %c0_0] : memref<8x64xf32, #tpu.memory_space<vmem>>, vector<8x64xf32>
    %c0_1 = arith.constant 0 : index
    %c0_2 = arith.constant 0 : index
    %1 = vector.load %arg3[%c0_1, %c0_2] : memref<8x64xf32, #tpu.memory_space<vmem>>, vector<8x64xf32>
    %2 = arith.addf %0, %1 : vector<8x64xf32>
    %c0_3 = arith.constant 0 : index
    %c0_4 = arith.constant 0 : index
    %3 = vector.load %arg4[%c0_3, %c0_4] : memref<8x64xf32, #tpu.memory_space<vmem>>, vector<8x64xf32>
    tpu.vector_store %arg4[%c0_3, %c0_4], %2 {strides = array<i32>} : memref<8x64xf32, #tpu.memory_space<vmem>>, vector<8x64xf32>,
    return
  }
  func.func @transform_0(%arg0: i32) -> i32 {
    %c0_i32 = arith.constant 0 : i32
    %c0_i32_0 = arith.constant 0 : i32
    return %c0_i32 : i32
  }
  func.func @transform_1(%arg0: i32) -> (i32, i32) {
    %c0_i32 = arith.constant 0 : i32
    %c0_i32_0 = arith.constant 0 : i32
    return %arg0, %c0_i32 : i32, i32
  }
  func.func @transform_2(%arg0: i32) -> (i32, i32) {
    %c0_i32 = arith.constant 0 : i32
    %c0_i32_0 = arith.constant 0 : i32
    return %arg0, %c0_i32 : i32, i32
  }
  func.func @transform_3(%arg0: i32) -> (i32, i32) {
    %c0_i32 = arith.constant 0 : i32
    %c0_i32_0 = arith.constant 0 : i32
    return %arg0, %c0_i32 : i32, i32
  }
}

</mosaic_0001>

<bundles_post_ra>
// kernel: tpu_custom_call.1
= control target key start
LH: loop header
LB: loop body
LE: loop exit
PB: predicated region body
PF: predicated region fallthrough
CT: control target
= control target key end

     0   :  { %9 = vsyncpa [#allocation4], 0  ;;  %s195_s0 = inlined_call_operand.<no memory space> [shape: s32[1], index: 0, kind: input, shape index: {}]   ;;  %s196_s1 = inlined_call_operand.hbm [shape: f32[8,64], index: 1, kind: input, shape index: {}]   ;;  %s197_s2 = inlined_call_operand.hbm [shape: f32[8,64], index: 2, kind: input, shape index: {}]   ;;  %s198_s3 = inlined_call_operand.hbm [shape: f32[8,64], index: 3, kind: output, shape index: {}]  }
   0x1   :  { %10 = vsyncpa [#allocation7], 0 }
   0x2   :  { %11 = vsyncpa [#allocation5], 0  ;;  %s136_s12 = smov [#allocation3]   ;;  %s137_s14 = smov [#allocation6]  }
   0x3   :  { %s20_s13 = sshll.u32 %s136_s12, 4  ;;  %s30_s15 = sshll.u32 %s137_s14, 4  ;;  %s21_s13 = int_to_ptr.vmem [resolvable:$true] %s20_s13  ;;  %s31_s15 = int_to_ptr.vmem [resolvable:$true] %s30_s15 }
   0x4   :  { %s64_s17 = scalar_lea.hbm %s196_s1, 128 }
   0x5   :  { %p65_p0 = scmp.ne.s32.totalorder %s196_s1, %s64_s17  ;;  %p68_p1 = scmp.lt.u32.totalorder %s64_s17, %s196_s1 }
   0x7   :  { %p70_p2 = pnand %p68_p1, %p65_p0 }
   0x9   :  { %73 = shalt.err (!%p70_p2)
}
   0xa   :  { %s74_s22 = scalar_lea.vmem %s21_s13, 128  ;;  %p79_p4 = scmp.lt.s32.totalorder %s21_s13, %s21_s13 }
   0xb   :  { %p75_p3 = scmp.ne.s32.totalorder %s21_s13, %s74_s22  ;;  %p80_p5 = scmp.lt.s32.totalorder %s74_s22, %s74_s22 }
   0xd   :  { %p81_p6 = por %p80_p5, %p79_p4 }
   0xf   :  { %p82_p7 = pnand %p81_p6, %p75_p3 }
  0x11   :  { %85 = shalt.err (!%p82_p7)
}
  0x12   :  { %23 = dma.hbm_to_vmem [thread:$0]  %s196_s1, 128, %s21_s13, [#allocation4]  }
  0x13   :  { %s86_s27 = scalar_lea.hbm %s197_s2, 128 }
  0x14   :  { %p87_p8 = scmp.ne.s32.totalorder %s197_s2, %s86_s27  ;;  %p90_p9 = scmp.lt.u32.totalorder %s86_s27, %s197_s2 }
  0x16   :  { %p92_p10 = pnand %p90_p9, %p87_p8 }
  0x18   :  { %95 = shalt.err (!%p92_p10)
}
  0x19   :  { %s96_s5 = scalar_lea.vmem %s31_s15, 128  ;;  %p101_p12 = scmp.lt.s32.totalorder %s31_s15, %s31_s15 }
  0x1a   :  { %p97_p11 = scmp.ne.s32.totalorder %s31_s15, %s96_s5  ;;  %p102_p13 = scmp.lt.s32.totalorder %s96_s5, %s96_s5 }
  0x1c   :  { %p103_p0 = por %p102_p13, %p101_p12 }
  0x1e   :  { %p104_p1 = pnand %p103_p0, %p97_p11 }
  0x20   :  { %107 = shalt.err (!%p104_p1)
}
  0x21   :  { %33 = dma.hbm_to_vmem [thread:$0]  %s197_s2, 128, %s31_s15, [#allocation7]  }
  0x22   :  { %130 = dma.done.wait [#allocation4], 128  }
  0x23   :  { %131 = vsyncadd [#allocation4], 4294967168 }
  0x24   :  { %132 = dma.done.wait [#allocation7], 128  }
  0x25   :  { %133 = vsyncadd [#allocation7], 4294967168  ;;  %s138_s7 = smov [#allocation8]   ;;  %v40_v0 = vld [vmem:[#allocation3] sm:$0xff]  ;;  %v41_v1 = vld [vmem:[#allocation6] sm:$0xff]  ;;  %vm43_vm0 = vcmask 523264  }
  0x26   :  { %s51_s8 = sshll.u32 %s138_s7, 4  ;;  %v42_v2 = vadd.f32 %v41_v1, %v40_v0  ;;  %s52_s8 = int_to_ptr.vmem [resolvable:$true] %s51_s8 }
  0x27   :  { %s108_s9 = scalar_lea.vmem %s52_s8, 128  ;;  %p113_p3 = scmp.lt.s32.totalorder %s52_s8, %s52_s8 }
  0x28   :  { %44 = vst.msk [vmem:[#allocation8] sm:$0xff] %vm43_vm0, %v42_v2  ;;  %p109_p2 = scmp.ne.s32.totalorder %s52_s8, %s108_s9  ;;  %p114_p4 = scmp.lt.s32.totalorder %s108_s9, %s108_s9 }
  0x2a   :  { %p115_p5 = por %p114_p4, %p113_p3 }
  0x2c   :  { %p116_p6 = pnand %p115_p5, %p109_p2 }
  0x2e   :  { %119 = shalt.err (!%p116_p6)
}
  0x2f   :  { %s120_s11 = scalar_lea.hbm %s198_s3, 128 }
  0x30   :  { %p121_p7 = scmp.ne.s32.totalorder %s198_s3, %s120_s11  ;;  %p124_p8 = scmp.lt.u32.totalorder %s120_s11, %s198_s3 }
  0x32   :  { %p126_p9 = pnand %p124_p8, %p121_p7 }
  0x34   :  { %129 = shalt.err (!%p126_p9)
}
  0x35   :  { %54 = dma.vmem_to_hbm [thread:$0]  %s52_s8, 128, %s198_s3, [#allocation5]  }
  0x36   :  { %134 = dma.done.wait [#allocation5], 128  }
  0x37   :  { %135 = vsyncadd [#allocation5], 4294967168 }
  0x38   :  { %58 = vsyncpa [#allocation4], 1 }
  0x39   :  { %59 = vsyncpa [#allocation7], 1 }
  0x3a   :  { %60 = vsyncpa [#allocation5], 1 }

</bundles_post_ra>
